<compile_context>
chip_gen: v7x
topology: tpu7x:2x2x1
jax: 0.10.0
libtpu: 0.0.40
codegen_flags: <defaults>
</compile_context>

<pallas_src>
import functools
import math

import jax
import jax.numpy as jnp
from jax import lax
from jax.experimental import pallas as pl
from jax.experimental.pallas import tpu as pltpu


# ----------------------------- Pallas kernel --------------------------------
def _gp_sumsq_kernel(g_ref, out_ref, acc_ref, *, n_chunks, chunk_w, kpg, tile_m,
                     true_m, need_mask):
    """One (row_tile, col_group, col_tile) grid step of the sum-of-squares reduction.

    g_ref   : (tile_r, tile_m) tile of the flattened gradient (any float dtype)
    out_ref : (1, tile_r, 1) per-row partial sum-of-squares for this column group
              (written at the last column tile of the group)
    acc_ref : (tile_r, chunk_w) f32 lane-partial accumulator (VMEM scratch)
    """
    k = pl.program_id(2)

    @pl.when(k == 0)
    def _init():
        acc_ref[...] = jnp.zeros_like(acc_ref)

    tile_r = g_ref.shape[0]
    if need_mask:
        gidx = pl.program_id(1)
        col0 = (gidx * kpg + k) * tile_m            # logical column offset of this tile
        lane = lax.broadcasted_iota(jnp.int32, (tile_r, chunk_w), 1)

    # Hot path: per 128-lane chunk -> load, upcast, (mask), square, VPU-add into a
    # vreg-resident partial; one scratch RMW per tile.
    partial = None
    for j in range(n_chunks):
        gj = g_ref[:, j * chunk_w:(j + 1) * chunk_w].astype(jnp.float32)
        if need_mask:
            gj = jnp.where(lane < (true_m - col0 - j * chunk_w), gj, 0.0)
        sq = gj * gj
        partial = sq if partial is None else partial + sq
    acc_ref[...] += partial

    # One-time finalize per (row tile, column group): cross-lane reduce -> per-row
    # partial sum of squares.  Off the per-tile hot path.
    @pl.when(k == pl.num_programs(2) - 1)
    def _finalize():
        out_ref[0] = jnp.sum(acc_ref[...], axis=1, keepdims=True)   # (tile_r, 1)


# ------------------------------ Pallas wrapper -------------------------------
def gradient_penalty_from_grad(grad_flat, *, tile_m=None,
                               target_tile_bytes=4 * 1024 * 1024):
    """grad_flat: (B, N) float array -> scalar mean((||grad||_2 - 1)^2), f32."""
    B, N = grad_flat.shape

    # Sublane packing: view (B, N) as (B*fold, N/fold) so the second-minor dim is a
    # multiple of 8.  Pure metadata reshape (same row-major bytes) -> free.
    fold = 8 // math.gcd(B, 8)
    if fold > 1 and N % fold != 0:
        fold = 1
    R, M = B * fold, N // fold
    g2 = grad_flat.reshape(R, M)
    itemsize = jnp.dtype(g2.dtype).itemsize

    # Row tile: <=128 keeps the vreg-resident lane-partial at <=16 vregs.
    tile_r = R if R <= 128 else 128

    # Column tile: ~target_tile_bytes per (double-buffered) input tile, lane-dense,
    # never larger than the (128-rounded-down) column extent; ragged edge is masked
    # in-kernel, so NO jnp.pad / extra HBM copy.
    MAX_CHUNKS = 128
    if tile_m is None:
        if M <= 128:
            tile_m = M
        else:
            desired = max(128, target_tile_bytes // (tile_r * itemsize))
            desired = (desired // 128) * 128
            desired = min(desired, 128 * MAX_CHUNKS)
            tile_m = min(desired, (M // 128) * 128)
    assert tile_m == M or tile_m % 128 == 0, "tile_m must be a multiple of 128 or == M"

    if tile_m >= 128 and tile_m % 128 == 0:
        chunk_w, n_chunks = 128, tile_m // 128
    else:
        chunk_w, n_chunks = tile_m, 1

    n_row_tiles = pl.cdiv(R, tile_r)
    kt_total = pl.cdiv(M, tile_m)
    # >=2 parallel column groups so both v7x TensorCores work even with 1 row tile.
    n_groups = 2 if kt_total >= 2 else 1
    kpg = pl.cdiv(kt_total, n_groups)
    # Mask whenever the logical column span (groups * steps * tile_m) overhangs M
    # (ragged last tile and/or a clamped duplicate tile in the padded group).
    need_mask = (n_groups * kpg * tile_m) != M

    r_pad = n_row_tiles * tile_r

    out = pl.pallas_call(
        functools.partial(_gp_sumsq_kernel, n_chunks=n_chunks, chunk_w=chunk_w,
                          kpg=kpg, tile_m=tile_m, true_m=M, need_mask=need_mask),
        out_shape=jax.ShapeDtypeStruct((n_groups, r_pad, 1), jnp.float32),
        grid_spec=pltpu.PrefetchScalarGridSpec(
            num_scalar_prefetch=0,
            grid=(n_row_tiles, n_groups, kpg),
            in_specs=[pl.BlockSpec(
                (tile_r, tile_m),
                # clamp the column-block index so a padded group step never DMAs OOB;
                # its contribution is fully masked to zero in-kernel.
                lambda r, g, k: (r, jnp.minimum(g * kpg + k, kt_total - 1)))],
            out_specs=pl.BlockSpec((1, tile_r, 1), lambda r, g, k: (g, r, 0)),
            scratch_shapes=[pltpu.VMEM((tile_r, chunk_w), jnp.float32)],
        ),
        compiler_params=pltpu.CompilerParams(
            # row tiles and column groups are independent (megacore / v7x 2 TCs);
            # the column-step axis is the reduction -> innermost and "arbitrary".
            dimension_semantics=("parallel", "parallel", "arbitrary"),
            # 2 x <=4 MiB input buffers + 64 KiB acc: fits v5e/v6e/v7x comfortably.
            vmem_limit_bytes=48 * 1024 * 1024,
        ),
    )(g2)

    # Tiny jnp finish: drop padded garbage rows, combine column groups, fold
    # sub-rows per sample, sqrt, penalty, batch mean.
    # TODO(synk): clamp/eps before sqrt if a custom_vjp is added (d/dx sqrt at 0).
    per_row = jnp.sum(out[:, :R, 0], axis=0)                 # (R,)
    per_sample = per_row.reshape(B, fold).sum(axis=1)        # (B,)
    norm = jnp.sqrt(per_sample)
    return jnp.mean((norm - 1.0) ** 2)


# ------------------------------- glue (JAX) ---------------------------------
def gradient_penalty_loss(critic_fn, interp):
    """Forward of GradientPenaltyLoss; torch.autograd.grad is reproduced with jax.vjp."""
    # TODO(synk): add a jax.custom_vjp around gradient_penalty_from_grad so the
    # penalty can itself be differentiated w.r.t. critic params (create_graph=True
    # in the original), and longer term fuse the sum-of-squares into the critic's
    # backward so grad_interp never round-trips HBM.
    interp_crit, vjp_fn = jax.vjp(critic_fn, interp)
    grad_outputs = jnp.ones_like(interp_crit)          # get_grad_outputs(...)
    (grad_interp,) = vjp_fn(grad_outputs)
    Bsz = grad_interp.shape[0]
    grad_flat = grad_interp.reshape(Bsz, -1)            # .view(B, -1); keep vjp dtype
    return gradient_penalty_from_grad(grad_flat)


# -------------------------- deterministic "critic" --------------------------
def make_critic(C, H, W, out_dim=1):
    N = C * H * W
    k = jax.random.PRNGKey(42)
    w = jax.random.normal(k, (N, out_dim), dtype=jnp.float32) * 0.02

    def critic_fn(x):  # x: (B, C, H, W)
        return x.reshape(x.shape[0], -1) @ w

    return critic_fn


if __name__ == "__main__":
    B, C, H, W = 2, 4, 16, 16
    key = jax.random.PRNGKey(0)
    interp = jax.random.normal(key, (B, C, H, W), dtype=jnp.float32)

    critic_fn = make_critic(C, H, W)
    loss = gradient_penalty_loss(critic_fn, interp)
    jax.block_until_ready(loss)

    # Pure-JAX reference for the Pallas portion.
    _, vjp_fn = jax.vjp(critic_fn, interp)
    (g,) = vjp_fn(jnp.ones((B, 1), jnp.float32))
    g_flat = g.reshape(B, -1)
    ref = jnp.mean((jnp.linalg.norm(g_flat, axis=1) - 1.0) ** 2)
    assert jnp.allclose(loss, ref, rtol=1e-5, atol=1e-5), (loss, ref)

    # Multi-column-tile / 2-parallel-group reduction path.
    loss_tiled = gradient_penalty_from_grad(g_flat, tile_m=128)
    jax.block_until_ready(loss_tiled)
    assert jnp.allclose(loss_tiled, ref, rtol=1e-5, atol=1e-5), (loss_tiled, ref)

    # Ragged column edge + in-kernel masking + bf16 input + sublane fold.
    k2 = jax.random.PRNGKey(1)
    g_bf16 = (jax.random.normal(k2, (3, 1224), dtype=jnp.float32) * 0.05).astype(jnp.bfloat16)
    loss2 = gradient_penalty_from_grad(g_bf16, tile_m=128)
    jax.block_until_ready(loss2)
    ref2 = jnp.mean((jnp.linalg.norm(g_bf16.astype(jnp.float32), axis=1) - 1.0) ** 2)
    assert jnp.allclose(loss2, ref2, rtol=1e-4, atol=1e-4), (loss2, ref2)

    # Multiple row tiles with a ragged last row tile (garbage rows sliced in jnp).
    k3 = jax.random.PRNGKey(2)
    g_rows = jax.random.normal(k3, (136, 256), dtype=jnp.float32) * 0.1
    loss3 = gradient_penalty_from_grad(g_rows)
    jax.block_until_ready(loss3)
    ref3 = jnp.mean((jnp.linalg.norm(g_rows, axis=1) - 1.0) ** 2)
    assert jnp.allclose(loss3, ref3, rtol=1e-5, atol=1e-5), (loss3, ref3)

    print("KERNEL_OK")
</pallas_src>

<mosaic_0001>
module attributes {stable_mosaic.version = 11 : i64} {
  func.func @_gp_sumsq_kernel(%arg0: i32, %arg1: i32, %arg2: i32, %arg3: memref<8x256xf32, #tpu.memory_space<vmem>>, %arg4: memref<1x8x1xf32, #tpu.memory_space<vmem>>, %arg5: memref<8x128xf32, #tpu.memory_space<vmem>>) attributes {dimension_semantics = [#tpu.dimension_semantics<parallel>, #tpu.dimension_semantics<parallel>, #tpu.dimension_semantics<arbitrary>], iteration_bounds = array<i64: 1, 1, 1>, scalar_prefetch = 0 : i64, scratch_operands = 1 : i64, tpu.core_type = #tpu.core_type<tc>, window_params = [{transform_indices = @transform_0, window_bounds = array<i64: 8, 256>}, {transform_indices = @transform_1, window_bounds = array<i64: 1, 8, 1>}]} {
    %c0_i32 = arith.constant 0 : i32
    %0 = arith.cmpi eq, %arg2, %c0_i32 : i32
    %1 = arith.extui %0 : i1 to i32
    %c0_i32_0 = arith.constant 0 : i32
    %2 = arith.cmpi ne, %1, %c0_i32_0 : i32
    scf.if %2 {
      %cst = arith.constant 0.000000e+00 : f32
      %14 = vector.broadcast %cst : f32 to vector<8x128xf32>
      %c0_9 = arith.constant 0 : index
      %c0_10 = arith.constant 0 : index
      %15 = vector.load %arg5[%c0_9, %c0_10] : memref<8x128xf32, #tpu.memory_space<vmem>>, vector<8x128xf32>
      tpu.vector_store %arg5[%c0_9, %c0_10], %14 {strides = array<i32>} : memref<8x128xf32, #tpu.memory_space<vmem>>, vector<8x128xf32>,
    } else {
    }
    %c0 = arith.constant 0 : index
    %c0_1 = arith.constant 0 : index
    %3 = vector.load %arg3[%c0, %c0_1] : memref<8x256xf32, #tpu.memory_space<vmem>>, vector<8x128xf32>
    %4 = arith.mulf %3, %3 : vector<8x128xf32>
    %c0_2 = arith.constant 0 : index
    %c128 = arith.constant 128 : index
    %5 = vector.load %arg3[%c0_2, %c128] : memref<8x256xf32, #tpu.memory_space<vmem>>, vector<8x128xf32>
    %6 = arith.mulf %5, %5 : vector<8x128xf32>
    %7 = arith.addf %4, %6 : vector<8x128xf32>
    %c0_3 = arith.constant 0 : index
    %c0_4 = arith.constant 0 : index
    %8 = vector.load %arg5[%c0_3, %c0_4] : memref<8x128xf32, #tpu.memory_space<vmem>>, vector<8x128xf32>
    %9 = arith.addf %8, %7 : vector<8x128xf32>
    %c0_5 = arith.constant 0 : index
    %c0_6 = arith.constant 0 : index
    %10 = vector.load %arg5[%c0_5, %c0_6] : memref<8x128xf32, #tpu.memory_space<vmem>>, vector<8x128xf32>
    tpu.vector_store %arg5[%c0_5, %c0_6], %9 {strides = array<i32>} : memref<8x128xf32, #tpu.memory_space<vmem>>, vector<8x128xf32>,
    %c0_i32_7 = arith.constant 0 : i32
    %11 = arith.cmpi eq, %arg2, %c0_i32_7 : i32
    %12 = arith.extui %11 : i1 to i32
    %c0_i32_8 = arith.constant 0 : i32
    %13 = arith.cmpi ne, %12, %c0_i32_8 : i32
    scf.if %13 {
      %c0_9 = arith.constant 0 : index
      %c0_10 = arith.constant 0 : index
      %14 = vector.load %arg5[%c0_9, %c0_10] : memref<8x128xf32, #tpu.memory_space<vmem>>, vector<8x128xf32>
      %cst = arith.constant dense<0.000000e+00> : vector<8xf32>
      %15 = vector.multi_reduction <add>, %14, %cst [1] : vector<8x128xf32> to vector<8xf32>
      %16 = vector.shape_cast %15 : vector<8xf32> to vector<8x1xf32>
      %c0_11 = arith.constant 0 : index
      %c0_12 = arith.constant 0 : index
      %c0_13 = arith.constant 0 : index
      %17 = vector.load %arg4[%c0_11, %c0_12, %c0_13] : memref<1x8x1xf32, #tpu.memory_space<vmem>>, vector<1x8x1xf32>
      %18 = vector.shape_cast %17 : vector<1x8x1xf32> to vector<8x1xf32>
      %19 = vector.shape_cast %16 : vector<8x1xf32> to vector<1x8x1xf32>
      tpu.vector_store %arg4[%c0_11, %c0_12, %c0_13], %19 {strides = array<i32>} : memref<1x8x1xf32, #tpu.memory_space<vmem>>, vector<1x8x1xf32>,
    } else {
    }
    return
  }
  func.func @transform_0(%arg0: i32, %arg1: i32, %arg2: i32) -> (i32, i32) {
    %c1_i32 = arith.constant 1 : i32
    %0 = arith.muli %arg1, %c1_i32 : i32
    %1 = arith.addi %0, %arg2 : i32
    %c0_i32 = arith.constant 0 : i32
    %2 = arith.minsi %1, %c0_i32 : i32
    %c0_i32_0 = arith.constant 0 : i32
    return %arg0, %2 : i32, i32
  }
  func.func @transform_1(%arg0: i32, %arg1: i32, %arg2: i32) -> (i32, i32, i32) {
    %c0_i32 = arith.constant 0 : i32
    %c0_i32_0 = arith.constant 0 : i32
    return %arg1, %arg0, %c0_i32 : i32, i32, i32
  }
}

</mosaic_0001>

<bundles_post_ra>
// kernel: tpu_custom_call.1
= control target key start
LH: loop header
LB: loop body
LE: loop exit
PB: predicated region body
PF: predicated region fallthrough
CT: control target
= control target key end

     0   :  { %6 = vsyncpa [#allocation4], 0  ;;  %s83_s6 = smov [#allocation3]   ;;  %s109_s0 = inlined_call_operand.hbm [shape: f32[8,256], index: 0, kind: input, shape index: {}]   ;;  %s110_s1 = inlined_call_operand.vmem [shape: f32[1,8,1], index: 1, kind: output, shape index: {}]  }
   0x1   :  { %s19_s7 = sshll.u32 %s83_s6, 4  ;;  %s59_s10 = scalar_lea.hbm %s109_s0, 256  ;;  %s20_s7 = int_to_ptr.vmem [resolvable:$true] %s19_s7 }
   0x2   :  { %p60_p0 = scmp.ne.s32.totalorder %s109_s0, %s59_s10  ;;  %p63_p1 = scmp.lt.u32.totalorder %s59_s10, %s109_s0 }
   0x4   :  { %p65_p2 = pnand %p63_p1, %p60_p0 }
   0x6   :  { %68 = shalt.err (!%p65_p2)
}
   0x7   :  { %s69_s15 = scalar_lea.vmem %s20_s7, 256  ;;  %p74_p4 = scmp.lt.s32.totalorder %s20_s7, %s20_s7 }
   0x8   :  { %p70_p3 = scmp.ne.s32.totalorder %s20_s7, %s69_s15  ;;  %p75_p5 = scmp.lt.s32.totalorder %s69_s15, %s69_s15 }
   0xa   :  { %p76_p6 = por %p75_p5, %p74_p4 }
   0xc   :  { %p77_p7 = pnand %p76_p6, %p70_p3 }
   0xe   :  { %80 = shalt.err (!%p77_p7)
}
   0xf   :  { %22 = dma.hbm_to_vmem [thread:$0]  %s109_s0, 256, %s20_s7, [#allocation4]  }
  0x10   :  { %81 = dma.done.wait [#allocation4], 256  }
  0x11   :  { %82 = vsyncadd [#allocation4], 4294967040  ;;  %v35_v0 = vld [vmem:[#allocation3] sm:$0xff]  ;;  %v37_v1 = vld [vmem:[#allocation3 + $0x8] sm:$0xff]  ;;  %vm49_vm0 = vcmask 7168  }
  0x12   :  { %v36_v2 = vmul.f32 %v35_v0, %v35_v0  ;;  %v38_v3 = vmul.f32 %v37_v1, %v37_v1 }
  0x14   :  { %v39_v4 = vadd.f32 %v38_v3, %v36_v2 }
  0x16   :  { %47 = vadd.xlane.f32.xlu0 %v39_v4 }
  0xa3   :  { %v48_v5 = vpop.xlane.xlu0 %47 }
  0xa4   :  { %50 = vst.msk [vmem:[%s110_s1] sm:$0xff] %vm49_vm0, %v48_v5 }
  0xa5   :  { %55 = vsyncpa [#allocation4], 1 }

</bundles_post_ra>
